<compile_context>
chip_gen: v6e
topology: v6e:2x2x1
jax: 0.10.0
libtpu: 0.0.40
codegen_flags: <defaults>
</compile_context>

<pallas_src>
import functools

import jax
import jax.numpy as jnp
from jax.experimental import pallas as pl
from jax.experimental.pallas import tpu as pltpu


# ----------------------------- parameter setup (glue, plain JAX) -----------------------------

def _calc_bands_pha(start_hz=2.0, end_hz=20.0, n_bands=50):
    mid = jnp.linspace(start_hz, end_hz, n_bands)
    return jnp.stack([mid - mid / 4.0, mid + mid / 4.0], axis=1)  # (n_bands, 2)


def _calc_bands_amp(start_hz=60.0, end_hz=160.0, n_bands=30):
    mid = jnp.linspace(start_hz, end_hz, n_bands)
    return jnp.stack([mid - mid / 8.0, mid + mid / 8.0], axis=1)  # (n_bands, 2)


def design_fir_bank(bands_hz, fs, numtaps):
    """Hamming-windowed ideal bandpass FIR per band. bands_hz: (F, 2). Returns (F, numtaps) f32."""
    # TODO(synk): gpac's StaticBandPassFilter uses its own fir1-style order selection;
    # here we use a fixed, deterministic 65-tap Hamming-windowed sinc design.
    m = jnp.arange(numtaps, dtype=jnp.float32)
    n = m - (numtaps - 1) / 2.0
    hamming = 0.54 - 0.46 * jnp.cos(2.0 * jnp.pi * m / (numtaps - 1))
    w_lo = bands_hz[:, 0:1] / (fs / 2.0)   # normalized to Nyquist
    w_hi = bands_hz[:, 1:2] / (fs / 2.0)
    ideal = w_hi * jnp.sinc(w_hi * n[None, :]) - w_lo * jnp.sinc(w_lo * n[None, :])
    h = ideal * hamming[None, :]
    return h.astype(jnp.float32)


def make_bandpass_bank(fs, pha_start_hz=2.0, pha_end_hz=20.0, pha_n_bands=8,
                       amp_start_hz=60.0, amp_end_hz=160.0, amp_n_bands=8,
                       numtaps=65):
    pha_bands = _calc_bands_pha(pha_start_hz, pha_end_hz, pha_n_bands)
    amp_bands = _calc_bands_amp(amp_start_hz, amp_end_hz, amp_n_bands)
    all_bands = jnp.concatenate([pha_bands, amp_bands], axis=0)  # vstack
    filters = design_fir_bank(all_bands, fs, numtaps)            # (F, K)
    pha_mids = pha_bands.mean(-1)
    amp_mids = amp_bands.mean(-1)
    return filters, pha_mids, amp_mids


def _round_up(x, m):
    return ((x + m - 1) // m) * m


def build_toeplitz_weight(filters, seq_len, compute_dtype=jnp.float32):
    """Banded Toeplitz conv-as-matmul weight.

    filters : (F, K)  FIR bank
    Returns W of shape (C, F * seq_len) with C = round_up(seq_len + 2*pad, 128),
    where W[p, f*L + t] = filters[f, p - t] for 0 <= p - t < K, else 0.
    Built once at "module init" (like the PyTorch module builds its filters).
    """
    F, K = filters.shape
    L = seq_len
    pad = (K - 1) // 2
    Lpad = L + 2 * pad
    C = _round_up(Lpad, 128)                     # aligned contraction dim

    p = jnp.arange(Lpad)[:, None]                # padded-sample index  (Lpad, 1)
    t = jnp.arange(L)[None, :]                   # output time index    (1, L)
    k = p - t                                    # tap index            (Lpad, L)
    valid = (k >= 0) & (k < K)
    kc = jnp.clip(k, 0, K - 1)
    wb = jnp.where(valid[None, :, :], filters[:, kc], 0.0)   # (F, Lpad, L)
    W = jnp.transpose(wb, (1, 0, 2)).reshape(Lpad, F * L)    # (Lpad, F*L)
    W = jnp.pad(W, ((0, C - Lpad), (0, 0)))                  # zero rows -> no effect
    return W.astype(compute_dtype)


def _pick_tile_n(Np):
    for cand in (256, 128, 64, 32, 16, 8):
        if Np % cand == 0:
            return cand
    return Np


def _pick_tile_fl(FL):
    if FL % 128 != 0:
        return FL  # full-extent block is always legal
    # Largest lane-aligned tile that still gives >= 2 grid blocks (v7x dual-TC).
    for cand in (1024, 512, 384, 256, 128):
        if FL % cand == 0 and FL // cand >= 2:
            return cand
    return FL


# ----------------------------- Pallas kernel (hot path) -----------------------------

def _bpf_matmul_kernel(x_ref, w_ref, o_ref):
    """One (TILE_N, C) x (C, TILE_FL) MXU matmul per grid step.

    x_ref : (TILE_N, C)       reflect-padded, zero-extended signal rows
    w_ref : (C, TILE_FL)      banded-Toeplitz FIR weight slab
    o_ref : (TILE_N, TILE_FL) filtered output slab (time on lanes, lane-dense)
    """
    o_ref[...] = jnp.dot(
        x_ref[...], w_ref[...], preferred_element_type=jnp.float32
    ).astype(o_ref.dtype)


def bandpass_filter_forward(x, weight, *, n_bands, numtaps, edge_len=0):
    """x: (B, S, L) float32, weight: (C, n_bands*L) from build_toeplitz_weight.

    Returns (B, S, n_bands, L) (optionally edge-trimmed), float32.
    """
    B, S, L = x.shape
    F = n_bands
    K = numtaps
    pad = (K - 1) // 2
    Lpad = L + 2 * pad
    C, FL = weight.shape
    assert FL == F * L and C >= Lpad

    N = B * S
    Np = _round_up(N, 8)       # sublane alignment

    xf = x.reshape(N, L)
    # 'reflect' padding (matches torch padding_mode='reflect'); same-length output.
    xpad = jnp.pad(xf, ((0, 0), (pad, pad)), mode="reflect")
    # Zero-pad rows to a multiple of 8 and the contraction dim to C (multiple of 128)
    # so every block is an unmasked (8,128)-aligned tile.
    xpad = jnp.pad(xpad, ((0, Np - N), (0, C - Lpad))).astype(weight.dtype)

    tile_n = _pick_tile_n(Np)
    tile_fl = _pick_tile_fl(FL)
    grid = (Np // tile_n, FL // tile_fl)

    out = pl.pallas_call(
        _bpf_matmul_kernel,
        out_shape=jax.ShapeDtypeStruct((Np, FL), jnp.float32),
        grid_spec=pltpu.PrefetchScalarGridSpec(
            num_scalar_prefetch=0,
            grid=grid,
            in_specs=[
                pl.BlockSpec((tile_n, C), lambda i, j: (i, 0)),
                pl.BlockSpec((C, tile_fl), lambda i, j: (0, j)),
            ],
            out_specs=pl.BlockSpec((tile_n, tile_fl), lambda i, j: (i, j)),
        ),
        compiler_params=pltpu.CompilerParams(
            dimension_semantics=("parallel", "parallel"),
        ),
    )(xpad, weight)

    out = out[:N].reshape(B, S, F, L)
    if edge_len > 0:
        out = out[..., edge_len:L - edge_len]
    return out


# ----------------------------- reference (pure JAX) -----------------------------

def _reference(x, filters):
    B, S, L = x.shape
    F, K = filters.shape
    pad = (K - 1) // 2
    xf = x.reshape(B * S, L)
    xpad = jnp.pad(xf, ((0, 0), (pad, pad)), mode="reflect")
    wins = jnp.stack([xpad[:, k:k + L] for k in range(K)], axis=1)  # (N, K, L)
    out = jnp.einsum("fk,nkl->nfl", filters, wins)
    return out.reshape(B, S, F, L)


# ----------------------------- main -----------------------------

if __name__ == "__main__":
    # Small, consistent shapes: batch=2, n_segments=3, seq_len=128, fs=512 Hz
    batch, n_segments, seq_len = 2, 3, 128
    fs = 512.0
    pha_n_bands, amp_n_bands = 8, 8           # F = 16 bands total
    numtaps = 65

    filters, pha_mids, amp_mids = make_bandpass_bank(
        fs,
        pha_start_hz=2.0, pha_end_hz=20.0, pha_n_bands=pha_n_bands,
        amp_start_hz=60.0, amp_end_hz=160.0, amp_n_bands=amp_n_bands,
        numtaps=numtaps,
    )

    # Built once, like the PyTorch module builds its filter bank at __init__.
    # compute_dtype=jnp.bfloat16 doubles MXU throughput (f32 accumulation) at the
    # cost of ~1e-2 relative error; keep float32 here to hold the 1e-3 check.
    W = build_toeplitz_weight(filters, seq_len, compute_dtype=jnp.float32)

    key = jax.random.PRNGKey(0)
    x = jax.random.normal(key, (batch, n_segments, seq_len), dtype=jnp.float32)

    fwd = jax.jit(functools.partial(
        bandpass_filter_forward,
        n_bands=pha_n_bands + amp_n_bands,
        numtaps=numtaps,
        edge_len=0,
    ))
    y = fwd(x, W)
    y = jax.block_until_ready(y)

    assert y.shape == (batch, n_segments, pha_n_bands + amp_n_bands, seq_len), y.shape
    assert y.dtype == jnp.float32

    y_ref = _reference(x, filters)
    max_err = float(jnp.max(jnp.abs(y - y_ref)))
    assert max_err < 1e-3, f"max abs error {max_err}"

    print("KERNEL_OK")
</pallas_src>

<mosaic_0001>
module attributes {stable_mosaic.version = 11 : i64} {
  func.func @_bpf_matmul_kernel(%arg0: i32, %arg1: i32, %arg2: memref<8x256xf32, #tpu.memory_space<vmem>>, %arg3: memref<256x1024xf32, #tpu.memory_space<vmem>>, %arg4: memref<8x1024xf32, #tpu.memory_space<vmem>>) attributes {dimension_semantics = [#tpu.dimension_semantics<parallel>, #tpu.dimension_semantics<parallel>], iteration_bounds = array<i64: 1, 2>, scalar_prefetch = 0 : i64, scratch_operands = 0 : i64, tpu.core_type = #tpu.core_type<tc>, window_params = [{transform_indices = @transform_0, window_bounds = array<i64: 8, 256>}, {transform_indices = @transform_1, window_bounds = array<i64: 256, 1024>}, {transform_indices = @transform_2, window_bounds = array<i64: 8, 1024>}]} {
    %c0 = arith.constant 0 : index
    %c0_0 = arith.constant 0 : index
    %0 = vector.load %arg2[%c0, %c0_0] : memref<8x256xf32, #tpu.memory_space<vmem>>, vector<8x256xf32>
    %c0_1 = arith.constant 0 : index
    %c0_2 = arith.constant 0 : index
    %1 = vector.load %arg3[%c0_1, %c0_2] : memref<256x1024xf32, #tpu.memory_space<vmem>>, vector<256x1024xf32>
    %cst = arith.constant dense<0.000000e+00> : vector<8x1024xf32>
    %2 = tpu.matmul %0, %1, %cst {dimension_numbers = #tpu.dot_dimension_numbers<[1], [0], [0], [1], [0, 0, 1, 1], [], []>} : vector<8x256xf32>, vector<256x1024xf32>, vector<8x1024xf32> -> vector<8x1024xf32>
    %c0_3 = arith.constant 0 : index
    %c0_4 = arith.constant 0 : index
    %3 = vector.load %arg4[%c0_3, %c0_4] : memref<8x1024xf32, #tpu.memory_space<vmem>>, vector<8x1024xf32>
    tpu.vector_store %arg4[%c0_3, %c0_4], %2 {strides = array<i32>} : memref<8x1024xf32, #tpu.memory_space<vmem>>, vector<8x1024xf32>,
    return
  }
  func.func @transform_0(%arg0: i32, %arg1: i32) -> (i32, i32) {
    %c0_i32 = arith.constant 0 : i32
    %c0_i32_0 = arith.constant 0 : i32
    return %arg0, %c0_i32 : i32, i32
  }
  func.func @transform_1(%arg0: i32, %arg1: i32) -> (i32, i32) {
    %c0_i32 = arith.constant 0 : i32
    %c0_i32_0 = arith.constant 0 : i32
    return %c0_i32, %arg1 : i32, i32
  }
  func.func @transform_2(%arg0: i32, %arg1: i32) -> (i32, i32) {
    %c0_i32 = arith.constant 0 : i32
    return %arg0, %arg1 : i32, i32
  }
}

</mosaic_0001>

<bundles_post_ra>
// kernel: bandpass_filter_forward.1
= control target key start
LH: loop header
LB: loop body
LE: loop exit
PB: predicated region body
PF: predicated region fallthrough
CT: control target
= control target key end

     0   :  { %7 = vsyncpa [#allocation3], 0  ;;  %s1410_s0 = inlined_call_operand.vmem [shape: f32[8,256], index: 0, kind: input, shape index: {}]   ;;  %s1411_s1 = inlined_call_operand.hbm [shape: f32[256,2048], index: 1, kind: input, shape index: {}]   ;;  %s1412_s2 = inlined_call_operand.vmem [shape: f32[8,2048], index: 2, kind: output, shape index: {}]  }
   0x1   :  { %9 = vsyncpa [#allocation3 + $0x1], 0  ;;  %s1037_s9 = smov 0   ;;  %s1039_s10 = smov 0  }
   0x2   :  { %s1041_s11 = smov 0   ;;  %s1043_s12 = smov 0  }
   0x3   :  { %s1045_s13 = smov 0   ;;  %s1047_s14 = smov 0  }
   0x4 LB: > { %s865_s15 = sadd.s32 4294967295, %s1016_s14   ;;  %s24_s16 = sadd.s32 1, %s1012_s13  ;;  %s1016_s14 = sphi %s1047_s14, %s15_s14   ;;  %s1012_s13 = sphi %s1045_s13, %s1420_s13   ;;  %s1008_s12 = sphi %s1043_s12, %s1419_s12   ;;  %s1004_s11 = sphi %s1041_s11, %s1418_s11   ;;  %s1000_s10 = sphi %s1039_s10, %s1417_s10   ;;  %s996_s9 = sphi %s1037_s9, %s1416_s9  }
   0x5   : > { %p25_p0 = scmp.ge.s32.totalorder %s24_s16, 2  ;;  %s60_s17 = sadd.s32 1, %s1004_s11 }
   0x6   : > { %p67_p1 = scmp.ne.s32.totalorder %s1004_s11, %s1000_s10  ;;  %p68_p2 = scmp.eq.s32.totalorder %s1016_s14, 0 }
   0x7   : > { %s1422_s16 = smov (%p25_p0, %s24_s16), 0  ;;  %p73_p4 = scmp.ne.s32.totalorder %s1000_s10, %s996_s9 }
   0x8   : > { %p1073_p3 = por %p68_p2, %p67_p1  ;;  %s57_s19 = ssub.s32 %s1012_s13, %s1422_s16 }
   0x9   : > { %p74_p5 = scmp.eq.s32.totalorder %s865_s15, 0  ;;  %p58_p6 = scmp.eq.s32.totalorder %s57_s19, 0 }
   0xa   : > { %p886_p8 = scmp.lt.s32.totalorder %s1016_s14, 2  ;;  %s133_s22 = sand.u32 1, %s1004_s11  }
   0xb   : > { %p1080_p7 = por %p74_p5, %p73_p4  ;;  %s879_s23 = sshll.u32 %s1012_s13, 10 }
   0xc   : > { %s1086_s21 = scalar_select %p58_p6, %s1004_s11, %s60_s17  }
   0xd   : > { %s870_s24 = sshll.u32 %s133_s22, 11  ;;  %s143_s27 = scalar_lea.hbm %s1411_s1, %s879_s23 }
   0xe   : > { %s137_s28 = scalar_lea.vmem [#allocation2], %s870_s24  ;;  %p1095_p9 = pnand %p886_p8, %p1073_p3 }
   0xf   : > { %s144_s29 = sshll.u32 %s137_s28, 4  ;;  %p873_p10 = scmp.ge.s32.totalorder %s1016_s14, 1  ;;  %s145_s29 = int_to_ptr.vmem [resolvable:$true] %s144_s29 }
  0x10   : > { %s134_s3 = scalar_lea.sflag [#allocation3], %s133_s22  ;;  %p940_p11 = pneg %p1095_p9 }
  0x11   : > { %s951_s4 = scalar_lea.vmem %s145_s29, 32768  ;;  %s1018_s5 = smov [#allocation2]  }
  0x12   : > { %p952_p12 = scmp.ne.s32.totalorder %s145_s29, %s951_s4  ;;  %s956_s6 = sshll.u32 %s1018_s5, 4  ;;  %s957_s6 = int_to_ptr.vmem [resolvable:$false] %s956_s6 }
  0x13   : > { %s958_s7 = scalar_lea.vmem %s957_s6, 65536  ;;  %p959_p1 = scmp.lt.s32.totalorder %s145_s29, %s957_s6 }
  0x14   : > { %p954_p13 = pnand %p952_p12, %p940_p11  ;;  %p960_p2 = scmp.lt.s32.totalorder %s958_s7, %s951_s4 }
  0x16   : > { %p955_p0 = pneg %p954_p13  ;;  %p961_p3 = por %p960_p2, %p959_p1 }
  0x18   : > { %p962_p4 = pnand %p961_p3, %p955_p0 }
  0x1a   : > { %965 = shalt.err (!%p962_p4)
}
  0x1b   : > { %s1019_s8 = smov 2048   ;;  %s1020_s9 = smov 1024  }
  0x1c   : > { %s1021_s15 = smov 64   ;;  %p152_p5 = scmp.lt.s32.totalorder %s1016_s14, 3 }
  0x1d   : > { %885 = dma.hbm_to_vmem [thread:$0]  (!%p1095_p9), %s143_s27, 32768, %s145_s29, %s134_s3, %s1019_s8, %s1020_s9, %s1021_s15  }
  0x1e   : > { %p153_p6 = pnand %p873_p10, %p152_p5 }
  0x1f   : > { %s158_s17 = sand.u32 (!%p153_p6), 1, %s1000_s10  }
  0x20   : > { %156 = sbr.rel (%p153_p6) target bundleno = 366 (0x16e), region = 28  ;;  %s874_s18 = sshll.u32 (!%p153_p6), %s158_s17, 11 }
  0x21   : > { %s159_s19 = scalar_lea.sflag (!%p153_p6), [#allocation3], %s158_s17  ;;  %s1108_s22 = scalar_lea.vmem (!%p153_p6), [#allocation2], %s874_s18 }
  0x25   : > { %991 = dma.done.wait (%p1080_p7), %s159_s19, 32768  }
  0x26   : > { %993 = vsyncadd (%p1080_p7), %s159_s19, 4294934528  ;;  %v331_v0 = vld [vmem:[%s1108_s22 + $0x3c8] sm:$0xff]  ;;  %v333_v1 = vld [vmem:[%s1108_s22 + $0x3d8] sm:$0xff]  ;;  %s875_s26 = sshll.u32 %s1008_s12, 3 }
  0x27   : > { %v330_v2 = vld [vmem:[%s1108_s22 + $0x3c0] sm:$0xff]  ;;  %466 = vmatprep.subr.mxu0 %v331_v0  ;;  %537 = vmatprep.subr.mxu1 %v333_v1  ;;  %v332_v3 = vld [vmem:[%s1108_s22 + $0x3d0] sm:$0xff]  ;;  %v323_v4 = vld [vmem:[%s1108_s22 + $0x388] sm:$0xff]  ;;  %p201_p7 = scmp.lt.s32.totalorder %s875_s26, 15 }
  0x28   : > { %v325_v5 = vld [vmem:[%s1108_s22 + $0x398] sm:$0xff]  ;;  %467 = vmatpush1.msra.mxu0 %v330_v2  ;;  %538 = vmatpush1.msra.mxu1 %v332_v3  ;;  %v322_v6 = vld [vmem:[%s1108_s22 + $0x380] sm:$0xff]  ;;  %v324_v7 = vld [vmem:[%s1108_s22 + $0x390] sm:$0xff] }
  0x29   : > { %v315_v8 = vld [vmem:[%s1108_s22 + $0x348] sm:$0xff]  ;;  %468 = vmatprep.subr.mxu0 %v323_v4  ;;  %539 = vmatprep.subr.mxu1 %v325_v5  ;;  %v317_v9 = vld [vmem:[%s1108_s22 + $0x358] sm:$0xff]  ;;  %v314_v10 = vld [vmem:[%s1108_s22 + $0x340] sm:$0xff]  ;;  %s1424_s26 = smov (!%p201_p7, %s875_s26), 15 }
  0x2a   : > { %v316_v11 = vld [vmem:[%s1108_s22 + $0x350] sm:$0xff]  ;;  %469 = vmatpush1.msra.mxu0 %v322_v6  ;;  %540 = vmatpush1.msra.mxu1 %v324_v7  ;;  %v307_v12 = vld [vmem:[%s1108_s22 + $0x308] sm:$0xff]  ;;  %v309_v13 = vld [vmem:[%s1108_s22 + $0x318] sm:$0xff]  ;;  %s876_s27 = sshll.u32 %s1424_s26, 3 }
  0x2b   : > { %470 = vmatprep.subr.mxu0 %v315_v8  ;;  %541 = vmatprep.subr.mxu1 %v317_v9  ;;  %v306_v14 = vld [vmem:[%s1108_s22 + $0x300] sm:$0xff]  ;;  %v308_v15 = vld [vmem:[%s1108_s22 + $0x310] sm:$0xff]  ;;  %v299_v16 = vld [vmem:[%s1108_s22 + $0x2c8] sm:$0xff]  ;;  %s206_s30 = scalar_lea.vmem %s1412_s2, %s876_s27 }
  0x2c   : > { %471 = vmatpush1.msra.mxu0 %v314_v10  ;;  %542 = vmatpush1.msra.mxu1 %v316_v11  ;;  %v301_v17 = vld [vmem:[%s1108_s22 + $0x2d8] sm:$0xff]  ;;  %v298_v18 = vld [vmem:[%s1108_s22 + $0x2c0] sm:$0xff]  ;;  %v300_v19 = vld [vmem:[%s1108_s22 + $0x2d0] sm:$0xff] }
  0x2d   : > { %472 = vmatprep.subr.mxu0 %v307_v12  ;;  %543 = vmatprep.subr.mxu1 %v309_v13  ;;  %v291_v20 = vld [vmem:[%s1108_s22 + $0x288] sm:$0xff]  ;;  %v293_v21 = vld [vmem:[%s1108_s22 + $0x298] sm:$0xff]  ;;  %v290_v22 = vld [vmem:[%s1108_s22 + $0x280] sm:$0xff] }
  0x2e   : > { %473 = vmatpush1.msra.mxu0 %v306_v14  ;;  %544 = vmatpush1.msra.mxu1 %v308_v15  ;;  %v292_v23 = vld [vmem:[%s1108_s22 + $0x290] sm:$0xff]  ;;  %v283_v24 = vld [vmem:[%s1108_s22 + $0x248] sm:$0xff]  ;;  %v285_v25 = vld [vmem:[%s1108_s22 + $0x258] sm:$0xff] }
  0x2f   : > { %474 = vmatprep.subr.mxu0 %v299_v16  ;;  %545 = vmatprep.subr.mxu1 %v301_v17  ;;  %v282_v26 = vld [vmem:[%s1108_s22 + $0x240] sm:$0xff]  ;;  %v284_v27 = vld [vmem:[%s1108_s22 + $0x250] sm:$0xff]  ;;  %v275_v28 = vld [vmem:[%s1108_s22 + $0x208] sm:$0xff] }
  0x30   : > { %475 = vmatpush1.msra.mxu0 %v298_v18  ;;  %546 = vmatpush1.msra.mxu1 %v300_v19  ;;  %v277_v29 = vld [vmem:[%s1108_s22 + $0x218] sm:$0xff]  ;;  %v274_v30 = vld [vmem:[%s1108_s22 + $0x200] sm:$0xff]  ;;  %v276_v31 = vld [vmem:[%s1108_s22 + $0x210] sm:$0xff] }
  0x31   : > { %476 = vmatprep.subr.mxu0 %v291_v20  ;;  %547 = vmatprep.subr.mxu1 %v293_v21  ;;  %v267_v32 = vld [vmem:[%s1108_s22 + $0x1c8] sm:$0xff]  ;;  %v269_v33 = vld [vmem:[%s1108_s22 + $0x1d8] sm:$0xff]  ;;  %v266_v34 = vld [vmem:[%s1108_s22 + $0x1c0] sm:$0xff] }
  0x32   : > { %477 = vmatpush1.msra.mxu0 %v290_v22  ;;  %548 = vmatpush1.msra.mxu1 %v292_v23  ;;  %v268_v35 = vld [vmem:[%s1108_s22 + $0x1d0] sm:$0xff]  ;;  %v259_v36 = vld [vmem:[%s1108_s22 + $0x188] sm:$0xff]  ;;  %v261_v37 = vld [vmem:[%s1108_s22 + $0x198] sm:$0xff] }
  0x33   : > { %478 = vmatprep.subr.mxu0 %v283_v24  ;;  %549 = vmatprep.subr.mxu1 %v285_v25  ;;  %v258_v38 = vld [vmem:[%s1108_s22 + $0x180] sm:$0xff]  ;;  %v260_v39 = vld [vmem:[%s1108_s22 + $0x190] sm:$0xff]  ;;  %v251_v40 = vld [vmem:[%s1108_s22 + $0x148] sm:$0xff] }
  0x34   : > { %479 = vmatpush1.msra.mxu0 %v282_v26  ;;  %550 = vmatpush1.msra.mxu1 %v284_v27  ;;  %v253_v41 = vld [vmem:[%s1108_s22 + $0x158] sm:$0xff]  ;;  %v250_v42 = vld [vmem:[%s1108_s22 + $0x140] sm:$0xff]  ;;  %v252_v43 = vld [vmem:[%s1108_s22 + $0x150] sm:$0xff] }
  0x35   : > { %480 = vmatprep.subr.mxu0 %v275_v28  ;;  %551 = vmatprep.subr.mxu1 %v277_v29  ;;  %v243_v44 = vld [vmem:[%s1108_s22 + $0x108] sm:$0xff]  ;;  %v245_v45 = vld [vmem:[%s1108_s22 + $0x118] sm:$0xff]  ;;  %v242_v46 = vld [vmem:[%s1108_s22 + $0x100] sm:$0xff] }
  0x36   : > { %481 = vmatpush1.msra.mxu0 %v274_v30  ;;  %552 = vmatpush1.msra.mxu1 %v276_v31  ;;  %v244_v47 = vld [vmem:[%s1108_s22 + $0x110] sm:$0xff]  ;;  %v235_v48 = vld [vmem:[%s1108_s22 + $0xc8] sm:$0xff]  ;;  %v237_v49 = vld [vmem:[%s1108_s22 + $0xd8] sm:$0xff] }
  0x37   : > { %482 = vmatprep.subr.mxu0 %v267_v32  ;;  %553 = vmatprep.subr.mxu1 %v269_v33  ;;  %v234_v50 = vld [vmem:[%s1108_s22 + $0xc0] sm:$0xff]  ;;  %v236_v51 = vld [vmem:[%s1108_s22 + $0xd0] sm:$0xff]  ;;  %v227_v52 = vld [vmem:[%s1108_s22 + $0x88] sm:$0xff] }
  0x38   : > { %483 = vmatpush1.msra.mxu0 %v266_v34  ;;  %554 = vmatpush1.msra.mxu1 %v268_v35  ;;  %v229_v53 = vld [vmem:[%s1108_s22 + $0x98] sm:$0xff]  ;;  %v226_v54 = vld [vmem:[%s1108_s22 + $0x80] sm:$0xff]  ;;  %v228_v55 = vld [vmem:[%s1108_s22 + $0x90] sm:$0xff] }
  0x39   : > { %484 = vmatprep.subr.mxu0 %v259_v36  ;;  %555 = vmatprep.subr.mxu1 %v261_v37  ;;  %v219_v56 = vld [vmem:[%s1108_s22 + $0x48] sm:$0xff]  ;;  %v221_v57 = vld [vmem:[%s1108_s22 + $0x58] sm:$0xff]  ;;  %v218_v58 = vld [vmem:[%s1108_s22 + $0x40] sm:$0xff] }
  0x3a   : > { %485 = vmatpush1.msra.mxu0 %v258_v38  ;;  %556 = vmatpush1.msra.mxu1 %v260_v39  ;;  %v220_v59 = vld [vmem:[%s1108_s22 + $0x50] sm:$0xff]  ;;  %v211_v60 = vld [vmem:[%s1108_s22 + $0x8] sm:$0xff]  ;;  %v213_v61 = vld [vmem:[%s1108_s22 + $0x18] sm:$0xff] }
  0x3b   : > { %486 = vmatprep.subr.mxu0 %v251_v40  ;;  %557 = vmatprep.subr.mxu1 %v253_v41  ;;  %v210_v62 = vld [vmem:[%s1108_s22] sm:$0xff]  ;;  %v212_v63 = vld [vmem:[%s1108_s22 + $0x10] sm:$0xff]  ;;  %v459_v0 = vld [vmem:[%s1108_s22 + $0x7c8] sm:$0xff] }
  0x3c   : > { %487 = vmatpush1.msra.mxu0 %v250_v42  ;;  %558 = vmatpush1.msra.mxu1 %v252_v43  ;;  %v461_v1 = vld [vmem:[%s1108_s22 + $0x7d8] sm:$0xff]  ;;  %v458_v2 = vld [vmem:[%s1108_s22 + $0x7c0] sm:$0xff]  ;;  %v460_v3 = vld [vmem:[%s1108_s22 + $0x7d0] sm:$0xff] }
  0x3d   : > { %488 = vmatprep.subr.mxu0 %v243_v44  ;;  %559 = vmatprep.subr.mxu1 %v245_v45  ;;  %v451_v4 = vld [vmem:[%s1108_s22 + $0x788] sm:$0xff]  ;;  %v453_v5 = vld [vmem:[%s1108_s22 + $0x798] sm:$0xff]  ;;  %v450_v6 = vld [vmem:[%s1108_s22 + $0x780] sm:$0xff] }
  0x3e   : > { %489 = vmatpush1.msra.mxu0 %v242_v46  ;;  %560 = vmatpush1.msra.mxu1 %v244_v47  ;;  %v452_v7 = vld [vmem:[%s1108_s22 + $0x790] sm:$0xff]  ;;  %v443_v8 = vld [vmem:[%s1108_s22 + $0x748] sm:$0xff]  ;;  %v445_v9 = vld [vmem:[%s1108_s22 + $0x758] sm:$0xff] }
  0x3f   : > { %490 = vmatprep.subr.mxu0 %v235_v48  ;;  %561 = vmatprep.subr.mxu1 %v237_v49  ;;  %v442_v10 = vld [vmem:[%s1108_s22 + $0x740] sm:$0xff]  ;;  %v444_v11 = vld [vmem:[%s1108_s22 + $0x750] sm:$0xff]  ;;  %v435_v12 = vld [vmem:[%s1108_s22 + $0x708] sm:$0xff] }
  0x40   : > { %491 = vmatpush1.msra.mxu0 %v234_v50  ;;  %562 = vmatpush1.msra.mxu1 %v236_v51  ;;  %v437_v13 = vld [vmem:[%s1108_s22 + $0x718] sm:$0xff]  ;;  %v434_v14 = vld [vmem:[%s1108_s22 + $0x700] sm:$0xff]  ;;  %v436_v15 = vld [vmem:[%s1108_s22 + $0x710] sm:$0xff] }
  0x41   : > { %492 = vmatprep.subr.mxu0 %v227_v52  ;;  %563 = vmatprep.subr.mxu1 %v229_v53  ;;  %v427_v16 = vld [vmem:[%s1108_s22 + $0x6c8] sm:$0xff]  ;;  %v429_v17 = vld [vmem:[%s1108_s22 + $0x6d8] sm:$0xff]  ;;  %v426_v18 = vld [vmem:[%s1108_s22 + $0x6c0] sm:$0xff] }
  0x42   : > { %493 = vmatpush1.msra.mxu0 %v226_v54  ;;  %564 = vmatpush1.msra.mxu1 %v228_v55  ;;  %v428_v19 = vld [vmem:[%s1108_s22 + $0x6d0] sm:$0xff]  ;;  %v419_v20 = vld [vmem:[%s1108_s22 + $0x688] sm:$0xff]  ;;  %v421_v21 = vld [vmem:[%s1108_s22 + $0x698] sm:$0xff] }
  0x43   : > { %494 = vmatprep.subr.mxu0 %v219_v56  ;;  %565 = vmatprep.subr.mxu1 %v221_v57  ;;  %v418_v22 = vld [vmem:[%s1108_s22 + $0x680] sm:$0xff]  ;;  %v420_v23 = vld [vmem:[%s1108_s22 + $0x690] sm:$0xff]  ;;  %v411_v24 = vld [vmem:[%s1108_s22 + $0x648] sm:$0xff] }
  0x44   : > { %495 = vmatpush1.msra.mxu0 %v218_v58  ;;  %566 = vmatpush1.msra.mxu1 %v220_v59  ;;  %v413_v25 = vld [vmem:[%s1108_s22 + $0x658] sm:$0xff]  ;;  %v410_v26 = vld [vmem:[%s1108_s22 + $0x640] sm:$0xff]  ;;  %v412_v27 = vld [vmem:[%s1108_s22 + $0x650] sm:$0xff] }
  0x45   : > { %496 = vmatprep.subr.mxu0 %v211_v60  ;;  %567 = vmatprep.subr.mxu1 %v213_v61  ;;  %v403_v28 = vld [vmem:[%s1108_s22 + $0x608] sm:$0xff]  ;;  %v405_v29 = vld [vmem:[%s1108_s22 + $0x618] sm:$0xff]  ;;  %v402_v30 = vld [vmem:[%s1108_s22 + $0x600] sm:$0xff] }
  0x46   : > { %497 = vmatpush1.msra.mxu0 %v210_v62  ;;  %568 = vmatpush1.msra.mxu1 %v212_v63  ;;  %v404_v31 = vld [vmem:[%s1108_s22 + $0x610] sm:$0xff]  ;;  %v395_v32 = vld [vmem:[%s1108_s22 + $0x5c8] sm:$0xff]  ;;  %v397_v33 = vld [vmem:[%s1108_s22 + $0x5d8] sm:$0xff] }
  0x47   : > { %498 = vmatprep.subr.mxu0 %v459_v0  ;;  %569 = vmatprep.subr.mxu1 %v461_v1  ;;  %v394_v34 = vld [vmem:[%s1108_s22 + $0x5c0] sm:$0xff]  ;;  %v396_v35 = vld [vmem:[%s1108_s22 + $0x5d0] sm:$0xff]  ;;  %v387_v36 = vld [vmem:[%s1108_s22 + $0x588] sm:$0xff] }
  0x48   : > { %499 = vmatpush2.msra.mxu0 %v458_v2  ;;  %570 = vmatpush2.msra.mxu1 %v460_v3  ;;  %v389_v37 = vld [vmem:[%s1108_s22 + $0x598] sm:$0xff]  ;;  %v386_v38 = vld [vmem:[%s1108_s22 + $0x580] sm:$0xff]  ;;  %v388_v39 = vld [vmem:[%s1108_s22 + $0x590] sm:$0xff] }
  0x49   : > { %500 = vmatprep.subr.mxu0 %v451_v4  ;;  %571 = vmatprep.subr.mxu1 %v453_v5  ;;  %v379_v40 = vld [vmem:[%s1108_s22 + $0x548] sm:$0xff]  ;;  %v381_v41 = vld [vmem:[%s1108_s22 + $0x558] sm:$0xff]  ;;  %v378_v42 = vld [vmem:[%s1108_s22 + $0x540] sm:$0xff] }
  0x4a   : > { %501 = vmatpush2.msra.mxu0 %v450_v6  ;;  %572 = vmatpush2.msra.mxu1 %v452_v7  ;;  %v380_v43 = vld [vmem:[%s1108_s22 + $0x550] sm:$0xff]  ;;  %v371_v44 = vld [vmem:[%s1108_s22 + $0x508] sm:$0xff]  ;;  %v373_v45 = vld [vmem:[%s1108_s22 + $0x518] sm:$0xff] }
  0x4b   : > { %502 = vmatprep.subr.mxu0 %v443_v8  ;;  %573 = vmatprep.subr.mxu1 %v445_v9  ;;  %v370_v46 = vld [vmem:[%s1108_s22 + $0x500] sm:$0xff]  ;;  %v372_v47 = vld [vmem:[%s1108_s22 + $0x510] sm:$0xff]  ;;  %v363_v48 = vld [vmem:[%s1108_s22 + $0x4c8] sm:$0xff] }
  0x4c   : > { %503 = vmatpush2.msra.mxu0 %v442_v10  ;;  %574 = vmatpush2.msra.mxu1 %v444_v11  ;;  %v365_v49 = vld [vmem:[%s1108_s22 + $0x4d8] sm:$0xff]  ;;  %v362_v50 = vld [vmem:[%s1108_s22 + $0x4c0] sm:$0xff]  ;;  %v364_v51 = vld [vmem:[%s1108_s22 + $0x4d0] sm:$0xff] }
  0x4d   : > { %504 = vmatprep.subr.mxu0 %v435_v12  ;;  %575 = vmatprep.subr.mxu1 %v437_v13  ;;  %v355_v52 = vld [vmem:[%s1108_s22 + $0x488] sm:$0xff]  ;;  %v357_v53 = vld [vmem:[%s1108_s22 + $0x498] sm:$0xff]  ;;  %v354_v54 = vld [vmem:[%s1108_s22 + $0x480] sm:$0xff] }
  0x4e   : > { %505 = vmatpush2.msra.mxu0 %v434_v14  ;;  %576 = vmatpush2.msra.mxu1 %v436_v15  ;;  %v356_v55 = vld [vmem:[%s1108_s22 + $0x490] sm:$0xff]  ;;  %v347_v56 = vld [vmem:[%s1108_s22 + $0x448] sm:$0xff]  ;;  %v349_v57 = vld [vmem:[%s1108_s22 + $0x458] sm:$0xff] }
  0x4f   : > { %506 = vmatprep.subr.mxu0 %v427_v16  ;;  %577 = vmatprep.subr.mxu1 %v429_v17  ;;  %v346_v58 = vld [vmem:[%s1108_s22 + $0x440] sm:$0xff]  ;;  %v348_v59 = vld [vmem:[%s1108_s22 + $0x450] sm:$0xff]  ;;  %v339_v60 = vld [vmem:[%s1108_s22 + $0x408] sm:$0xff] }
  0x50   : > { %507 = vmatpush2.msra.mxu0 %v426_v18  ;;  %578 = vmatpush2.msra.mxu1 %v428_v19  ;;  %v341_v61 = vld [vmem:[%s1108_s22 + $0x418] sm:$0xff]  ;;  %v338_v62 = vld [vmem:[%s1108_s22 + $0x400] sm:$0xff]  ;;  %v1244_v63 = vld [vmem:[%s1410_s0 + $0x8] sm:$0xff] }
  0x51   : > { %508 = vmatprep.subr.mxu0 %v419_v20  ;;  %579 = vmatprep.subr.mxu1 %v421_v21  ;;  %v340_v0 = vld [vmem:[%s1108_s22 + $0x410] sm:$0xff]  ;;  %v1250_v1 = vld [vmem:[%s1410_s0] sm:$0xff]  ;;  %v335_v2 = vld [vmem:[%s1108_s22 + $0x3e8] sm:$0xff] }
  0x52   : > { %509 = vmatpush2.msra.mxu0 %v418_v22  ;;  %580 = vmatpush2.msra.mxu1 %v420_v23  ;;  %v337_v3 = vld [vmem:[%s1108_s22 + $0x3f8] sm:$0xff]  ;;  %v334_v4 = vld [vmem:[%s1108_s22 + $0x3e0] sm:$0xff]  ;;  %v336_v5 = vld [vmem:[%s1108_s22 + $0x3f0] sm:$0xff] }
  0x53   : > { %510 = vmatprep.subr.mxu0 %v411_v24  ;;  %581 = vmatprep.subr.mxu1 %v413_v25  ;;  %v327_v6 = vld [vmem:[%s1108_s22 + $0x3a8] sm:$0xff]  ;;  %v329_v7 = vld [vmem:[%s1108_s22 + $0x3b8] sm:$0xff]  ;;  %v326_v8 = vld [vmem:[%s1108_s22 + $0x3a0] sm:$0xff] }
  0x54   : > { %511 = vmatpush2.msra.mxu0 %v410_v26  ;;  %582 = vmatpush2.msra.mxu1 %v412_v27  ;;  %v328_v9 = vld [vmem:[%s1108_s22 + $0x3b0] sm:$0xff]  ;;  %v319_v10 = vld [vmem:[%s1108_s22 + $0x368] sm:$0xff]  ;;  %v321_v11 = vld [vmem:[%s1108_s22 + $0x378] sm:$0xff] }
  0x55   : > { %512 = vmatprep.subr.mxu0 %v403_v28  ;;  %583 = vmatprep.subr.mxu1 %v405_v29  ;;  %v318_v12 = vld [vmem:[%s1108_s22 + $0x360] sm:$0xff]  ;;  %v320_v13 = vld [vmem:[%s1108_s22 + $0x370] sm:$0xff]  ;;  %v311_v14 = vld [vmem:[%s1108_s22 + $0x328] sm:$0xff] }
  0x56   : > { %513 = vmatpush2.msra.mxu0 %v402_v30  ;;  %584 = vmatpush2.msra.mxu1 %v404_v31  ;;  %v313_v15 = vld [vmem:[%s1108_s22 + $0x338] sm:$0xff]  ;;  %v310_v16 = vld [vmem:[%s1108_s22 + $0x320] sm:$0xff]  ;;  %v312_v17 = vld [vmem:[%s1108_s22 + $0x330] sm:$0xff] }
  0x57   : > { %514 = vmatprep.subr.mxu0 %v395_v32  ;;  %585 = vmatprep.subr.mxu1 %v397_v33  ;;  %v303_v18 = vld [vmem:[%s1108_s22 + $0x2e8] sm:$0xff]  ;;  %v305_v19 = vld [vmem:[%s1108_s22 + $0x2f8] sm:$0xff]  ;;  %v302_v20 = vld [vmem:[%s1108_s22 + $0x2e0] sm:$0xff] }
  0x58   : > { %515 = vmatpush2.msra.mxu0 %v394_v34  ;;  %586 = vmatpush2.msra.mxu1 %v396_v35  ;;  %v304_v21 = vld [vmem:[%s1108_s22 + $0x2f0] sm:$0xff]  ;;  %v295_v22 = vld [vmem:[%s1108_s22 + $0x2a8] sm:$0xff]  ;;  %v297_v23 = vld [vmem:[%s1108_s22 + $0x2b8] sm:$0xff] }
  0x59   : > { %516 = vmatprep.subr.mxu0 %v387_v36  ;;  %587 = vmatprep.subr.mxu1 %v389_v37  ;;  %v294_v24 = vld [vmem:[%s1108_s22 + $0x2a0] sm:$0xff]  ;;  %v296_v25 = vld [vmem:[%s1108_s22 + $0x2b0] sm:$0xff]  ;;  %v287_v26 = vld [vmem:[%s1108_s22 + $0x268] sm:$0xff] }
  0x5a   : > { %517 = vmatpush2.msra.mxu0 %v386_v38  ;;  %588 = vmatpush2.msra.mxu1 %v388_v39  ;;  %v289_v27 = vld [vmem:[%s1108_s22 + $0x278] sm:$0xff]  ;;  %v286_v28 = vld [vmem:[%s1108_s22 + $0x260] sm:$0xff]  ;;  %v288_v29 = vld [vmem:[%s1108_s22 + $0x270] sm:$0xff] }
  0x5b   : > { %518 = vmatprep.subr.mxu0 %v379_v40  ;;  %589 = vmatprep.subr.mxu1 %v381_v41  ;;  %v279_v30 = vld [vmem:[%s1108_s22 + $0x228] sm:$0xff]  ;;  %v281_v31 = vld [vmem:[%s1108_s22 + $0x238] sm:$0xff]  ;;  %v278_v32 = vld [vmem:[%s1108_s22 + $0x220] sm:$0xff] }
  0x5c   : > { %519 = vmatpush2.msra.mxu0 %v378_v42  ;;  %590 = vmatpush2.msra.mxu1 %v380_v43  ;;  %v280_v33 = vld [vmem:[%s1108_s22 + $0x230] sm:$0xff]  ;;  %v271_v34 = vld [vmem:[%s1108_s22 + $0x1e8] sm:$0xff]  ;;  %v273_v35 = vld [vmem:[%s1108_s22 + $0x1f8] sm:$0xff] }
  0x5d   : > { %520 = vmatprep.subr.mxu0 %v371_v44  ;;  %591 = vmatprep.subr.mxu1 %v373_v45  ;;  %v270_v36 = vld [vmem:[%s1108_s22 + $0x1e0] sm:$0xff]  ;;  %v272_v37 = vld [vmem:[%s1108_s22 + $0x1f0] sm:$0xff]  ;;  %v263_v38 = vld [vmem:[%s1108_s22 + $0x1a8] sm:$0xff] }
  0x5e   : > { %521 = vmatpush2.msra.mxu0 %v370_v46  ;;  %592 = vmatpush2.msra.mxu1 %v372_v47  ;;  %v265_v39 = vld [vmem:[%s1108_s22 + $0x1b8] sm:$0xff]  ;;  %v262_v40 = vld [vmem:[%s1108_s22 + $0x1a0] sm:$0xff]  ;;  %v264_v41 = vld [vmem:[%s1108_s22 + $0x1b0] sm:$0xff] }
  0x5f   : > { %522 = vmatprep.subr.mxu0 %v363_v48  ;;  %593 = vmatprep.subr.mxu1 %v365_v49  ;;  %v255_v42 = vld [vmem:[%s1108_s22 + $0x168] sm:$0xff]  ;;  %v257_v43 = vld [vmem:[%s1108_s22 + $0x178] sm:$0xff]  ;;  %v254_v44 = vld [vmem:[%s1108_s22 + $0x160] sm:$0xff] }
  0x60   : > { %523 = vmatpush2.msra.mxu0 %v362_v50  ;;  %594 = vmatpush2.msra.mxu1 %v364_v51  ;;  %v256_v45 = vld [vmem:[%s1108_s22 + $0x170] sm:$0xff]  ;;  %v247_v46 = vld [vmem:[%s1108_s22 + $0x128] sm:$0xff]  ;;  %v249_v47 = vld [vmem:[%s1108_s22 + $0x138] sm:$0xff] }
  0x61   : > { %524 = vmatprep.subr.mxu0 %v355_v52  ;;  %595 = vmatprep.subr.mxu1 %v357_v53  ;;  %v246_v48 = vld [vmem:[%s1108_s22 + $0x120] sm:$0xff]  ;;  %v248_v49 = vld [vmem:[%s1108_s22 + $0x130] sm:$0xff]  ;;  %v239_v50 = vld [vmem:[%s1108_s22 + $0xe8] sm:$0xff] }
  0x62   : > { %525 = vmatpush2.msra.mxu0 %v354_v54  ;;  %596 = vmatpush2.msra.mxu1 %v356_v55  ;;  %v241_v51 = vld [vmem:[%s1108_s22 + $0xf8] sm:$0xff]  ;;  %v238_v52 = vld [vmem:[%s1108_s22 + $0xe0] sm:$0xff]  ;;  %v240_v53 = vld [vmem:[%s1108_s22 + $0xf0] sm:$0xff] }
  0x63   : > { %526 = vmatprep.subr.mxu0 %v347_v56  ;;  %597 = vmatprep.subr.mxu1 %v349_v57  ;;  %v231_v54 = vld [vmem:[%s1108_s22 + $0xa8] sm:$0xff]  ;;  %v233_v55 = vld [vmem:[%s1108_s22 + $0xb8] sm:$0xff]  ;;  %v230_v56 = vld [vmem:[%s1108_s22 + $0xa0] sm:$0xff] }
  0x64   : > { %527 = vmatpush2.msra.mxu0 %v346_v58  ;;  %598 = vmatpush2.msra.mxu1 %v348_v59  ;;  %v232_v57 = vld [vmem:[%s1108_s22 + $0xb0] sm:$0xff]  ;;  %v223_v58 = vld [vmem:[%s1108_s22 + $0x68] sm:$0xff]  ;;  %v225_v59 = vld [vmem:[%s1108_s22 + $0x78] sm:$0xff] }
  0x65   : > { %528 = vmatprep.subr.mxu0 %v339_v60  ;;  %599 = vmatprep.subr.mxu1 %v341_v61  ;;  %v222_v60 = vld [vmem:[%s1108_s22 + $0x60] sm:$0xff]  ;;  %v224_v61 = vld [vmem:[%s1108_s22 + $0x70] sm:$0xff] }
  0x66   : > { %529 = vmatpush2.msra.mxu0 %v338_v62  ;;  %530 = vmatprep.mubr.f32.mxu0 %v1244_v63  ;;  %v215_v62 = vld [vmem:[%s1108_s22 + $0x28] sm:$0xff] }
  0x67   : > { %600 = vmatpush2.msra.mxu1 %v340_v0  ;;  %601 = vmatprep.mubr.f32.mxu1 %v1244_v63  ;;  %v217_v0 = vld [vmem:[%s1108_s22 + $0x38] sm:$0xff] }
  0x68   : > { %531 = vmatmul.mubr.f32.vlgmr.msra.gmra.mxu0 %v1250_v1  ;;  %602 = vmatmul.mubr.f32.vlgmr.msra.gmra.mxu1 %v1250_v1 }
  0x69   : > { %608 = vmatprep.subr.mxu0 %v335_v2  ;;  %679 = vmatprep.subr.mxu1 %v337_v3  ;;  %v214_v2 = vld [vmem:[%s1108_s22 + $0x20] sm:$0xff]  ;;  %v216_v3 = vld [vmem:[%s1108_s22 + $0x30] sm:$0xff] }
  0x6a   : > { %609 = vmatpush1.msra.mxu0 %v334_v4  ;;  %680 = vmatpush1.msra.mxu1 %v336_v5  ;;  %v463_v4 = vld [vmem:[%s1108_s22 + $0x7e8] sm:$0xff]  ;;  %v465_v5 = vld [vmem:[%s1108_s22 + $0x7f8] sm:$0xff] }
  0x6b   : > { %610 = vmatprep.subr.mxu0 %v327_v6  ;;  %681 = vmatprep.subr.mxu1 %v329_v7  ;;  %v462_v6 = vld [vmem:[%s1108_s22 + $0x7e0] sm:$0xff]  ;;  %v464_v7 = vld [vmem:[%s1108_s22 + $0x7f0] sm:$0xff] }
  0x6c   : > { %611 = vmatpush1.msra.mxu0 %v326_v8  ;;  %682 = vmatpush1.msra.mxu1 %v328_v9  ;;  %v455_v8 = vld [vmem:[%s1108_s22 + $0x7a8] sm:$0xff]  ;;  %v457_v9 = vld [vmem:[%s1108_s22 + $0x7b8] sm:$0xff] }
  0x6d   : > { %612 = vmatprep.subr.mxu0 %v319_v10  ;;  %683 = vmatprep.subr.mxu1 %v321_v11  ;;  %v454_v10 = vld [vmem:[%s1108_s22 + $0x7a0] sm:$0xff]  ;;  %v456_v11 = vld [vmem:[%s1108_s22 + $0x7b0] sm:$0xff] }
  0x6e   : > { %613 = vmatpush1.msra.mxu0 %v318_v12  ;;  %684 = vmatpush1.msra.mxu1 %v320_v13  ;;  %v447_v12 = vld [vmem:[%s1108_s22 + $0x768] sm:$0xff]  ;;  %v449_v13 = vld [vmem:[%s1108_s22 + $0x778] sm:$0xff] }
  0x6f   : > { %614 = vmatprep.subr.mxu0 %v311_v14  ;;  %685 = vmatprep.subr.mxu1 %v313_v15  ;;  %v446_v14 = vld [vmem:[%s1108_s22 + $0x760] sm:$0xff]  ;;  %v448_v15 = vld [vmem:[%s1108_s22 + $0x770] sm:$0xff] }
  0x70   : > { %615 = vmatpush1.msra.mxu0 %v310_v16  ;;  %686 = vmatpush1.msra.mxu1 %v312_v17  ;;  %v439_v16 = vld [vmem:[%s1108_s22 + $0x728] sm:$0xff]  ;;  %v441_v17 = vld [vmem:[%s1108_s22 + $0x738] sm:$0xff] }
  0x71   : > { %616 = vmatprep.subr.mxu0 %v303_v18  ;;  %687 = vmatprep.subr.mxu1 %v305_v19  ;;  %v438_v18 = vld [vmem:[%s1108_s22 + $0x720] sm:$0xff]  ;;  %v440_v19 = vld [vmem:[%s1108_s22 + $0x730] sm:$0xff] }
  0x72   : > { %617 = vmatpush1.msra.mxu0 %v302_v20  ;;  %688 = vmatpush1.msra.mxu1 %v304_v21  ;;  %v431_v20 = vld [vmem:[%s1108_s22 + $0x6e8] sm:$0xff]  ;;  %v433_v21 = vld [vmem:[%s1108_s22 + $0x6f8] sm:$0xff] }
  0x73   : > { %618 = vmatprep.subr.mxu0 %v295_v22  ;;  %689 = vmatprep.subr.mxu1 %v297_v23  ;;  %v430_v22 = vld [vmem:[%s1108_s22 + $0x6e0] sm:$0xff]  ;;  %v432_v23 = vld [vmem:[%s1108_s22 + $0x6f0] sm:$0xff] }
  0x74   : > { %619 = vmatpush1.msra.mxu0 %v294_v24  ;;  %690 = vmatpush1.msra.mxu1 %v296_v25  ;;  %v423_v24 = vld [vmem:[%s1108_s22 + $0x6a8] sm:$0xff]  ;;  %v425_v25 = vld [vmem:[%s1108_s22 + $0x6b8] sm:$0xff] }
  0x75   : > { %620 = vmatprep.subr.mxu0 %v287_v26  ;;  %691 = vmatprep.subr.mxu1 %v289_v27  ;;  %v422_v26 = vld [vmem:[%s1108_s22 + $0x6a0] sm:$0xff]  ;;  %v424_v27 = vld [vmem:[%s1108_s22 + $0x6b0] sm:$0xff] }
  0x76   : > { %621 = vmatpush1.msra.mxu0 %v286_v28  ;;  %692 = vmatpush1.msra.mxu1 %v288_v29  ;;  %v415_v28 = vld [vmem:[%s1108_s22 + $0x668] sm:$0xff]  ;;  %v417_v29 = vld [vmem:[%s1108_s22 + $0x678] sm:$0xff] }
  0x77   : > { %622 = vmatprep.subr.mxu0 %v279_v30  ;;  %693 = vmatprep.subr.mxu1 %v281_v31  ;;  %v414_v30 = vld [vmem:[%s1108_s22 + $0x660] sm:$0xff]  ;;  %v416_v31 = vld [vmem:[%s1108_s22 + $0x670] sm:$0xff] }
  0x78   : > { %623 = vmatpush1.msra.mxu0 %v278_v32  ;;  %694 = vmatpush1.msra.mxu1 %v280_v33  ;;  %v407_v32 = vld [vmem:[%s1108_s22 + $0x628] sm:$0xff]  ;;  %v409_v33 = vld [vmem:[%s1108_s22 + $0x638] sm:$0xff] }
  0x79   : > { %624 = vmatprep.subr.mxu0 %v271_v34  ;;  %695 = vmatprep.subr.mxu1 %v273_v35  ;;  %v406_v34 = vld [vmem:[%s1108_s22 + $0x620] sm:$0xff]  ;;  %v408_v35 = vld [vmem:[%s1108_s22 + $0x630] sm:$0xff] }
  0x7a   : > { %625 = vmatpush1.msra.mxu0 %v270_v36  ;;  %696 = vmatpush1.msra.mxu1 %v272_v37  ;;  %v399_v36 = vld [vmem:[%s1108_s22 + $0x5e8] sm:$0xff]  ;;  %v401_v37 = vld [vmem:[%s1108_s22 + $0x5f8] sm:$0xff] }
  0x7b   : > { %626 = vmatprep.subr.mxu0 %v263_v38  ;;  %697 = vmatprep.subr.mxu1 %v265_v39  ;;  %v398_v38 = vld [vmem:[%s1108_s22 + $0x5e0] sm:$0xff]  ;;  %v400_v39 = vld [vmem:[%s1108_s22 + $0x5f0] sm:$0xff] }
  0x7c   : > { %627 = vmatpush1.msra.mxu0 %v262_v40  ;;  %698 = vmatpush1.msra.mxu1 %v264_v41  ;;  %v391_v40 = vld [vmem:[%s1108_s22 + $0x5a8] sm:$0xff]  ;;  %v393_v41 = vld [vmem:[%s1108_s22 + $0x5b8] sm:$0xff] }
  0x7d   : > { %628 = vmatprep.subr.mxu0 %v255_v42  ;;  %699 = vmatprep.subr.mxu1 %v257_v43  ;;  %v390_v42 = vld [vmem:[%s1108_s22 + $0x5a0] sm:$0xff]  ;;  %v392_v43 = vld [vmem:[%s1108_s22 + $0x5b0] sm:$0xff] }
  0x7e   : > { %629 = vmatpush1.msra.mxu0 %v254_v44  ;;  %700 = vmatpush1.msra.mxu1 %v256_v45  ;;  %v383_v44 = vld [vmem:[%s1108_s22 + $0x568] sm:$0xff]  ;;  %v385_v45 = vld [vmem:[%s1108_s22 + $0x578] sm:$0xff] }
  0x7f   : > { %630 = vmatprep.subr.mxu0 %v247_v46  ;;  %701 = vmatprep.subr.mxu1 %v249_v47  ;;  %v382_v46 = vld [vmem:[%s1108_s22 + $0x560] sm:$0xff]  ;;  %v384_v47 = vld [vmem:[%s1108_s22 + $0x570] sm:$0xff] }
  0x80   : > { %631 = vmatpush1.msra.mxu0 %v246_v48  ;;  %702 = vmatpush1.msra.mxu1 %v248_v49  ;;  %v375_v48 = vld [vmem:[%s1108_s22 + $0x528] sm:$0xff]  ;;  %v377_v49 = vld [vmem:[%s1108_s22 + $0x538] sm:$0xff] }
  0x81   : > { %632 = vmatprep.subr.mxu0 %v239_v50  ;;  %703 = vmatprep.subr.mxu1 %v241_v51  ;;  %v374_v50 = vld [vmem:[%s1108_s22 + $0x520] sm:$0xff]  ;;  %v376_v51 = vld [vmem:[%s1108_s22 + $0x530] sm:$0xff] }
  0x82   : > { %633 = vmatpush1.msra.mxu0 %v238_v52  ;;  %704 = vmatpush1.msra.mxu1 %v240_v53  ;;  %v367_v52 = vld [vmem:[%s1108_s22 + $0x4e8] sm:$0xff]  ;;  %v369_v53 = vld [vmem:[%s1108_s22 + $0x4f8] sm:$0xff] }
  0x83   : > { %634 = vmatprep.subr.mxu0 %v231_v54  ;;  %705 = vmatprep.subr.mxu1 %v233_v55  ;;  %v366_v54 = vld [vmem:[%s1108_s22 + $0x4e0] sm:$0xff]  ;;  %v368_v55 = vld [vmem:[%s1108_s22 + $0x4f0] sm:$0xff] }
  0x84   : > { %635 = vmatpush1.msra.mxu0 %v230_v56  ;;  %706 = vmatpush1.msra.mxu1 %v232_v57  ;;  %v359_v56 = vld [vmem:[%s1108_s22 + $0x4a8] sm:$0xff]  ;;  %v361_v57 = vld [vmem:[%s1108_s22 + $0x4b8] sm:$0xff] }
  0x85   : > { %636 = vmatprep.subr.mxu0 %v223_v58  ;;  %707 = vmatprep.subr.mxu1 %v225_v59  ;;  %v358_v58 = vld [vmem:[%s1108_s22 + $0x4a0] sm:$0xff]  ;;  %v360_v59 = vld [vmem:[%s1108_s22 + $0x4b0] sm:$0xff] }
  0x86   : > { %637 = vmatpush1.msra.mxu0 %v222_v60  ;;  %708 = vmatpush1.msra.mxu1 %v224_v61  ;;  %v351_v60 = vld [vmem:[%s1108_s22 + $0x468] sm:$0xff]  ;;  %v353_v61 = vld [vmem:[%s1108_s22 + $0x478] sm:$0xff] }
  0x87   : > { %638 = vmatprep.subr.mxu0 %v215_v62  ;;  %709 = vmatprep.subr.mxu1 %v217_v0  ;;  %v350_v62 = vld [vmem:[%s1108_s22 + $0x460] sm:$0xff]  ;;  %v352_v0 = vld [vmem:[%s1108_s22 + $0x470] sm:$0xff] }
  0x88   : > { %639 = vmatpush1.msra.mxu0 %v214_v2  ;;  %710 = vmatpush1.msra.mxu1 %v216_v3  ;;  %v343_v2 = vld [vmem:[%s1108_s22 + $0x428] sm:$0xff]  ;;  %v345_v3 = vld [vmem:[%s1108_s22 + $0x438] sm:$0xff] }
  0x89   : > { %640 = vmatprep.subr.mxu0 %v463_v4  ;;  %711 = vmatprep.subr.mxu1 %v465_v5  ;;  %v342_v4 = vld [vmem:[%s1108_s22 + $0x420] sm:$0xff]  ;;  %v344_v5 = vld [vmem:[%s1108_s22 + $0x430] sm:$0xff] }
  0x8a   : > { %641 = vmatpush2.msra.mxu0 %v462_v6  ;;  %712 = vmatpush2.msra.mxu1 %v464_v7 }
  0x8b   : > { %642 = vmatprep.subr.mxu0 %v455_v8  ;;  %713 = vmatprep.subr.mxu1 %v457_v9 }
  0x8c   : > { %643 = vmatpush2.msra.mxu0 %v454_v10  ;;  %714 = vmatpush2.msra.mxu1 %v456_v11 }
  0x8d   : > { %644 = vmatprep.subr.mxu0 %v447_v12  ;;  %715 = vmatprep.subr.mxu1 %v449_v13 }
  0x8e   : > { %645 = vmatpush2.msra.mxu0 %v446_v14  ;;  %716 = vmatpush2.msra.mxu1 %v448_v15 }
  0x8f   : > { %646 = vmatprep.subr.mxu0 %v439_v16  ;;  %717 = vmatprep.subr.mxu1 %v441_v17 }
  0x90   : > { %647 = vmatpush2.msra.mxu0 %v438_v18  ;;  %718 = vmatpush2.msra.mxu1 %v440_v19 }
  0x91   : > { %648 = vmatprep.subr.mxu0 %v431_v20  ;;  %719 = vmatprep.subr.mxu1 %v433_v21 }
  0x92   : > { %649 = vmatpush2.msra.mxu0 %v430_v22  ;;  %720 = vmatpush2.msra.mxu1 %v432_v23 }
  0x93   : > { %650 = vmatprep.subr.mxu0 %v423_v24  ;;  %721 = vmatprep.subr.mxu1 %v425_v25 }
  0x94   : > { %651 = vmatpush2.msra.mxu0 %v422_v26  ;;  %722 = vmatpush2.msra.mxu1 %v424_v27 }
  0x95   : > { %652 = vmatprep.subr.mxu0 %v415_v28  ;;  %723 = vmatprep.subr.mxu1 %v417_v29 }
  0x96   : > { %653 = vmatpush2.msra.mxu0 %v414_v30  ;;  %724 = vmatpush2.msra.mxu1 %v416_v31 }
  0x97   : > { %654 = vmatprep.subr.mxu0 %v407_v32  ;;  %725 = vmatprep.subr.mxu1 %v409_v33 }
  0x98   : > { %655 = vmatpush2.msra.mxu0 %v406_v34  ;;  %726 = vmatpush2.msra.mxu1 %v408_v35 }
  0x99   : > { %656 = vmatprep.subr.mxu0 %v399_v36  ;;  %727 = vmatprep.subr.mxu1 %v401_v37 }
  0x9a   : > { %657 = vmatpush2.msra.mxu0 %v398_v38  ;;  %728 = vmatpush2.msra.mxu1 %v400_v39 }
  0x9b   : > { %658 = vmatprep.subr.mxu0 %v391_v40  ;;  %729 = vmatprep.subr.mxu1 %v393_v41 }
  0x9c   : > { %659 = vmatpush2.msra.mxu0 %v390_v42  ;;  %730 = vmatpush2.msra.mxu1 %v392_v43 }
  0x9d   : > { %660 = vmatprep.subr.mxu0 %v383_v44  ;;  %731 = vmatprep.subr.mxu1 %v385_v45 }
  0x9e   : > { %661 = vmatpush2.msra.mxu0 %v382_v46  ;;  %732 = vmatpush2.msra.mxu1 %v384_v47 }
  0x9f   : > { %662 = vmatprep.subr.mxu0 %v375_v48  ;;  %733 = vmatprep.subr.mxu1 %v377_v49 }
  0xa0   : > { %663 = vmatpush2.msra.mxu0 %v374_v50  ;;  %734 = vmatpush2.msra.mxu1 %v376_v51 }
  0xa1   : > { %664 = vmatprep.subr.mxu0 %v367_v52  ;;  %735 = vmatprep.subr.mxu1 %v369_v53 }
  0xa2   : > { %665 = vmatpush2.msra.mxu0 %v366_v54  ;;  %736 = vmatpush2.msra.mxu1 %v368_v55 }
  0xa3   : > { %666 = vmatprep.subr.mxu0 %v359_v56  ;;  %737 = vmatprep.subr.mxu1 %v361_v57 }
  0xa4   : > { %667 = vmatpush2.msra.mxu0 %v358_v58  ;;  %738 = vmatpush2.msra.mxu1 %v360_v59 }
  0xa5   : > { %668 = vmatprep.subr.mxu0 %v351_v60  ;;  %739 = vmatprep.subr.mxu1 %v353_v61 }
  0xa6   : > { %669 = vmatpush2.msra.mxu0 %v350_v62  ;;  %740 = vmatpush2.msra.mxu1 %v352_v0 }
  0xa7   : > { %670 = vmatprep.subr.mxu0 %v343_v2  ;;  %741 = vmatprep.subr.mxu1 %v345_v3 }
  0xa8   : > { %671 = vmatpush2.msra.mxu0 %v342_v4  ;;  %672 = vmatprep.mubr.f32.mxu0 %v1244_v63 }
  0xa9   : > { %742 = vmatpush2.msra.mxu1 %v344_v5  ;;  %743 = vmatprep.mubr.f32.mxu1 %v1244_v63 }
  0xaa   : > { %673 = vmatmul.mubr.f32.vlgmr.msra.gmra.mxu0 %v1250_v1  ;;  %744 = vmatmul.mubr.f32.vlgmr.msra.gmra.mxu1 %v1250_v1 }
 0x128   : > { %v532_v6 = vpop.f32.mrf.mxu0  ;;  %v603_v7 = vpop.f32.mrf.mxu1 }
 0x129   : > { %750 = vst [vmem:[%s206_s30] sm:$0xff] %v532_v6  ;;  %752 = vst [vmem:[%s206_s30 + $0x10] sm:$0xff] %v603_v7 }
 0x12a   : > { %v534_v8 = vpop.f32.mrf.mxu0  ;;  %v605_v9 = vpop.f32.mrf.mxu1 }
 0x12b   : > { %751 = vst [vmem:[%s206_s30 + $0x8] sm:$0xff] %v534_v8  ;;  %753 = vst [vmem:[%s206_s30 + $0x18] sm:$0xff] %v605_v9 }
 0x16a   : > { %v674_v63 = vpop.f32.mrf.mxu0  ;;  %v745_v10 = vpop.f32.mrf.mxu1 }
 0x16b   : > { %754 = vst [vmem:[%s206_s30 + $0x20] sm:$0xff] %v674_v63  ;;  %756 = vst [vmem:[%s206_s30 + $0x30] sm:$0xff] %v745_v10 }
 0x16c   : > { %v676_v1 = vpop.f32.mrf.mxu0  ;;  %v747_v11 = vpop.f32.mrf.mxu1 }
 0x16d   : > { %755 = vst [vmem:[%s206_s30 + $0x28] sm:$0xff] %v676_v1  ;;  %757 = vst [vmem:[%s206_s30 + $0x38] sm:$0xff] %v747_v11 }
 0x16e PF: > { %s15_s14 = sadd.s32 1, %s1016_s14   ;;  %s1416_s9 = smov %s1000_s10 }
 0x16f   : > { %p12_p8 = scmp.ge.s32.totalorder %s15_s14, 4   ;;  %s1417_s10 = smov %s1004_s11 }
 0x170   : > { %s1418_s11 = smov %s1086_s21  ;;  %s1419_s12 = smov %s1012_s13 }
 0x171   : > { %s1420_s13 = smov %s1422_s16  ;;  %14 = sbr.rel (!%p12_p8) target bundleno = 4 (0x4), region = 71 }
 0x176   :  { %788 = vsyncpa [#allocation3], 1 }
 0x177   :  { %790 = vsyncpa [#allocation3 + $0x1], 1 }

</bundles_post_ra>
